<compile_context>
chip_gen: v7x
topology: tpu7x:2x2x1
jax: 0.10.0
libtpu: 0.0.40
codegen_flags: <defaults>
</compile_context>

<pallas_src>
import jax
import jax.numpy as jnp
from jax.experimental import pallas as pl
from jax.experimental.pallas import tpu as pltpu


def _round_up(x: int, m: int) -> int:
    return ((x + m - 1) // m) * m


def _cdiv(a: int, b: int) -> int:
    return -(-a // b)


def _predictor_kernel(x_ref, w1t_ref, b1_ref, w2_ref, b2_ref, o_ref):
    """One batch tile: o[b, 0] = relu(x[b, :] @ W1T + b1) . w2 + b2.

    Shapes (per tile):
      x_ref   : (TB, dim)      streamed activations (batch on sublanes)
      w1t_ref : (dim, hidden)  resident, pre-transposed, bf16 by default
      b1_ref  : (1, hidden)    resident, f32
      w2_ref  : (1, hidden)    resident, f32
      b2_ref  : (1,)           scalar in SMEM, f32
      o_ref   : (TB, 1)        per-example logits
    """
    w1t = w1t_ref[...]
    x = x_ref[...].astype(w1t.dtype)      # in-register cast, no extra HBM pass

    # First linear on the MXU, f32 accumulation; bias add + ReLU on the VPU.
    h = jnp.dot(x, w1t, preferred_element_type=jnp.float32) + b1_ref[...]
    h = jnp.maximum(h, 0.0)               # Dropout is identity at eval time.

    # Second linear (hidden -> 1): VPU multiply + lane (XLU) reduction; the
    # MXU stays free and each example reduces independently along lanes.
    y = jnp.sum(h * w2_ref[...], axis=1, keepdims=True) + b2_ref[0]

    o_ref[...] = y.astype(o_ref.dtype)


def prepare_params(w1, b1, w2, b2, *, compute_dtype=jnp.bfloat16):
    """One-time weight prep, hoisted out of the per-call path.

    Accepts PyTorch-native layouts: w1 (2*dim, dim), b1 (2*dim,),
    w2 (1, 2*dim), b2 (1,).
    """
    hidden, _ = w1.shape
    w1t = jnp.asarray(w1).T.astype(compute_dtype)             # (dim, hidden)
    b1r = jnp.asarray(b1).reshape(1, hidden).astype(jnp.float32)
    w2r = jnp.asarray(w2).reshape(1, hidden).astype(jnp.float32)
    b2r = jnp.asarray(b2).reshape(1).astype(jnp.float32)
    return w1t, b1r, w2r, b2r


def _pick_block_b(B, dim, x_itemsize, target_bytes=1 << 20, cap=8192):
    """Batch-tile rows sized by bytes (~1 MiB of x per tile), multiple of 8."""
    row_bytes = max(1, dim * x_itemsize)
    tb = _round_up(max(8, target_bytes // row_bytes), 128)
    tb = min(tb, cap)
    b_full = _round_up(B, 8)
    if tb >= b_full:
        # One tile would already cover the whole batch; if there is enough
        # work, split it in two so the "parallel" grid axis shards across the
        # two TensorCores on v7x (neutral on single-TC v5e/v6e).
        tb = b_full if b_full < 256 else _round_up(_cdiv(b_full, 2), 8)
    return tb


def predictor_forward(feats, params, *, block_b=None):
    """feats: (B, dim); params from prepare_params().  Returns (B, 1) logits."""
    B, dim = feats.shape
    w1t, b1r, w2r, b2r = params
    hidden = w1t.shape[1]

    tb = block_b if block_b is not None else _pick_block_b(
        B, dim, feats.dtype.itemsize)
    grid = _cdiv(B, tb)

    # Rough VMEM budget: double-buffered x stream + resident weights +
    # (TB, hidden) f32 intermediate; clamped to stay valid on v7x's 64 MiB.
    est = (2 * tb * dim * feats.dtype.itemsize
           + 2 * dim * hidden * w1t.dtype.itemsize
           + 4 * hidden * 4
           + tb * hidden * 4
           + 2 * tb * feats.dtype.itemsize)
    vmem_limit = int(min(48 << 20, max(32 << 20, 2 * est)))

    cost = pl.CostEstimate(
        flops=2 * B * dim * hidden + 4 * B * hidden,
        transcendentals=0,
        bytes_accessed=(feats.size * feats.dtype.itemsize
                        + w1t.size * w1t.dtype.itemsize
                        + (b1r.size + w2r.size + b2r.size) * 4
                        + B * feats.dtype.itemsize),
    )

    return pl.pallas_call(
        _predictor_kernel,
        out_shape=jax.ShapeDtypeStruct((B, 1), feats.dtype),
        grid=(grid,),
        in_specs=[
            pl.BlockSpec((tb, dim), lambda i: (i, 0)),            # streamed x tiles
            pl.BlockSpec((dim, hidden), lambda i: (0, 0)),        # resident W1^T
            pl.BlockSpec((1, hidden), lambda i: (0, 0)),          # resident b1
            pl.BlockSpec((1, hidden), lambda i: (0, 0)),          # resident w2
            pl.BlockSpec(memory_space=pltpu.MemorySpace.SMEM),    # scalar b2
        ],
        out_specs=pl.BlockSpec((tb, 1), lambda i: (i, 0)),        # per-example logits
        compiler_params=pltpu.CompilerParams(
            dimension_semantics=("parallel",),   # shards batch tiles on v7x's 2 TCs
            vmem_limit_bytes=vmem_limit,
        ),
        cost_estimate=cost,
    )(feats, w1t, b1r, w2r, b2r)


def init_params(key, dim, dtype=jnp.float32):
    """PyTorch nn.Linear-style init, PyTorch-native (out, in) weight layouts."""
    hidden = 2 * dim
    k1, k2, k3, k4 = jax.random.split(key, 4)
    bound1 = 1.0 / (dim ** 0.5)
    bound2 = 1.0 / (hidden ** 0.5)
    w1 = jax.random.uniform(k1, (hidden, dim), dtype, -bound1, bound1)
    b1 = jax.random.uniform(k2, (hidden,), dtype, -bound1, bound1)
    w2 = jax.random.uniform(k3, (1, hidden), dtype, -bound2, bound2)
    b2 = jax.random.uniform(k4, (1,), dtype, -bound2, bound2)
    return w1, b1, w2, b2


if __name__ == "__main__":
    key = jax.random.PRNGKey(0)
    k_feats, k_params, k_feats2 = jax.random.split(key, 3)

    batch, dim = 8, 32
    feats = jax.random.normal(k_feats, (batch, dim), jnp.float32)
    w1, b1, w2, b2 = init_params(k_params, dim)

    def reference(x):
        return jnp.maximum(x @ w1.T + b1, 0.0) @ w2.T + b2

    # One-time weight prep (hoisted out of the per-call path).
    params_bf16 = prepare_params(w1, b1, w2, b2)                        # default bf16 W1
    params_f32 = prepare_params(w1, b1, w2, b2, compute_dtype=jnp.float32)

    # f32-weights path (single tile, block equals full batch).
    out = jax.block_until_ready(predictor_forward(feats, params_f32))
    ref = reference(feats)
    assert out.shape == (batch, 1)
    assert jnp.allclose(out, ref, atol=5e-2, rtol=5e-2), "f32 mismatch"

    # Default bf16-weights path (f32 accumulation + f32 epilogue).
    out_bf16 = jax.block_until_ready(predictor_forward(feats, params_bf16))
    assert jnp.allclose(out_bf16, ref, atol=1e-1, rtol=1e-1), "bf16 mismatch"

    # Multi-tile grid with a partial boundary tile (no wrapper-side padding).
    batch2 = 300
    feats2 = jax.random.normal(k_feats2, (batch2, dim), jnp.float32)
    out2 = jax.block_until_ready(
        predictor_forward(feats2, params_bf16, block_b=128))
    ref2 = reference(feats2)
    assert out2.shape == (batch2, 1)
    assert jnp.allclose(out2, ref2, atol=1e-1, rtol=1e-1), "tiled mismatch"

    # Auto-sized tiles + bf16 feats (halves the streamed-x HBM traffic).
    out3 = jax.block_until_ready(
        predictor_forward(feats2.astype(jnp.bfloat16), params_bf16))
    assert out3.shape == (batch2, 1)
    assert jnp.allclose(out3.astype(jnp.float32), ref2, atol=2e-1, rtol=2e-1), \
        "bf16-feats mismatch"

    print("KERNEL_OK")
</pallas_src>

<mosaic_0001>
module attributes {stable_mosaic.version = 11 : i64} {
  func.func @_predictor_kernel(%arg0: i32, %arg1: memref<8x32xf32, #tpu.memory_space<vmem>>, %arg2: memref<32x64xf32, #tpu.memory_space<vmem>>, %arg3: memref<1x64xf32, #tpu.memory_space<vmem>>, %arg4: memref<1x64xf32, #tpu.memory_space<vmem>>, %arg5: memref<1xf32, #tpu.memory_space<smem>>, %arg6: memref<8x1xf32, #tpu.memory_space<vmem>>) attributes {dimension_semantics = [#tpu.dimension_semantics<parallel>], iteration_bounds = array<i64: 1>, scalar_prefetch = 0 : i64, scratch_operands = 0 : i64, tpu.core_type = #tpu.core_type<tc>, window_params = [{transform_indices = @transform_0, window_bounds = array<i64: 8, 32>}, {pipeline_mode = #tpu.pipeline_mode<synchronous>, transform_indices = @transform_1, window_bounds = array<i64: 32, 64>}, {pipeline_mode = #tpu.pipeline_mode<synchronous>, transform_indices = @transform_2, window_bounds = array<i64: 1, 64>}, {pipeline_mode = #tpu.pipeline_mode<synchronous>, transform_indices = @transform_3, window_bounds = array<i64: 1, 64>}, {transform_indices = @transform_4, window_bounds = array<i64: 1>}, {transform_indices = @transform_5, window_bounds = array<i64: 8, 1>}]} {
    %c0 = arith.constant 0 : index
    %c0_0 = arith.constant 0 : index
    %0 = vector.load %arg2[%c0, %c0_0] : memref<32x64xf32, #tpu.memory_space<vmem>>, vector<32x64xf32>
    %c0_1 = arith.constant 0 : index
    %c0_2 = arith.constant 0 : index
    %1 = vector.load %arg1[%c0_1, %c0_2] : memref<8x32xf32, #tpu.memory_space<vmem>>, vector<8x32xf32>
    %cst = arith.constant dense<0.000000e+00> : vector<8x64xf32>
    %2 = tpu.matmul %1, %0, %cst {dimension_numbers = #tpu.dot_dimension_numbers<[1], [0], [0], [1], [0, 0, 1, 1], [], []>} : vector<8x32xf32>, vector<32x64xf32>, vector<8x64xf32> -> vector<8x64xf32>
    %c0_3 = arith.constant 0 : index
    %c0_4 = arith.constant 0 : index
    %3 = vector.load %arg3[%c0_3, %c0_4] : memref<1x64xf32, #tpu.memory_space<vmem>>, vector<1x64xf32>
    %4 = vector.broadcast %3 : vector<1x64xf32> to vector<8x64xf32>
    %5 = arith.addf %2, %4 : vector<8x64xf32>
    %cst_5 = arith.constant 0.000000e+00 : f32
    %6 = vector.broadcast %cst_5 : f32 to vector<8x64xf32>
    %7 = arith.maximumf %5, %6 : vector<8x64xf32>
    %c0_6 = arith.constant 0 : index
    %c0_7 = arith.constant 0 : index
    %8 = vector.load %arg4[%c0_6, %c0_7] : memref<1x64xf32, #tpu.memory_space<vmem>>, vector<1x64xf32>
    %9 = vector.broadcast %8 : vector<1x64xf32> to vector<8x64xf32>
    %10 = arith.mulf %7, %9 : vector<8x64xf32>
    %cst_8 = arith.constant dense<0.000000e+00> : vector<8xf32>
    %11 = vector.multi_reduction <add>, %10, %cst_8 [1] : vector<8x64xf32> to vector<8xf32>
    %12 = vector.shape_cast %11 : vector<8xf32> to vector<8x1xf32>
    %c0_9 = arith.constant 0 : index
    %13 = memref.load %arg5[%c0_9] : memref<1xf32, #tpu.memory_space<smem>>
    %14 = vector.broadcast %13 : f32 to vector<8x1xf32>
    %15 = arith.addf %12, %14 : vector<8x1xf32>
    %c0_10 = arith.constant 0 : index
    %c0_11 = arith.constant 0 : index
    %16 = vector.load %arg6[%c0_10, %c0_11] : memref<8x1xf32, #tpu.memory_space<vmem>>, vector<8x1xf32>
    tpu.vector_store %arg6[%c0_10, %c0_11], %15 {strides = array<i32>} : memref<8x1xf32, #tpu.memory_space<vmem>>, vector<8x1xf32>,
    return
  }
  func.func @transform_0(%arg0: i32) -> (i32, i32) {
    %c0_i32 = arith.constant 0 : i32
    %c0_i32_0 = arith.constant 0 : i32
    return %arg0, %c0_i32 : i32, i32
  }
  func.func @transform_1(%arg0: i32) -> (i32, i32) {
    %c0_i32 = arith.constant 0 : i32
    %c0_i32_0 = arith.constant 0 : i32
    %c0_i32_1 = arith.constant 0 : i32
    return %c0_i32, %c0_i32_0 : i32, i32
  }
  func.func @transform_2(%arg0: i32) -> (i32, i32) {
    %c0_i32 = arith.constant 0 : i32
    %c0_i32_0 = arith.constant 0 : i32
    %c0_i32_1 = arith.constant 0 : i32
    return %c0_i32, %c0_i32_0 : i32, i32
  }
  func.func @transform_3(%arg0: i32) -> (i32, i32) {
    %c0_i32 = arith.constant 0 : i32
    %c0_i32_0 = arith.constant 0 : i32
    %c0_i32_1 = arith.constant 0 : i32
    return %c0_i32, %c0_i32_0 : i32, i32
  }
  func.func @transform_4(%arg0: i32) -> i32 {
    %c0_i32 = arith.constant 0 : i32
    %c0_i32_0 = arith.constant 0 : i32
    return %c0_i32 : i32
  }
  func.func @transform_5(%arg0: i32) -> (i32, i32) {
    %c0_i32 = arith.constant 0 : i32
    %c0_i32_0 = arith.constant 0 : i32
    return %arg0, %c0_i32 : i32, i32
  }
}

</mosaic_0001>

<bundles_post_ra>
// kernel: tpu_custom_call.1
= control target key start
LH: loop header
LB: loop body
LE: loop exit
PB: predicated region body
PF: predicated region fallthrough
CT: control target
= control target key end

     0   :  { %11 = vsyncpa [#allocation4], 0  ;;  %s317_s0 = inlined_call_operand.hbm [shape: f32[8,32], index: 0, kind: input, shape index: {}]   ;;  %s318_s1 = inlined_call_operand.hbm [shape: f32[32,64], index: 1, kind: input, shape index: {}]   ;;  %s319_s2 = inlined_call_operand.vmem [shape: f32[1,64], index: 2, kind: input, shape index: {}]   ;;  %s320_s3 = inlined_call_operand.vmem [shape: f32[1,64], index: 3, kind: input, shape index: {}]   ;;  %s321_s4 = inlined_call_operand.<no memory space> [shape: f32[1], index: 4, kind: input, shape index: {}]   ;;  %s322_s5 = inlined_call_operand.vmem [shape: f32[8,1], index: 5, kind: output, shape index: {}]  }
   0x1   :  { %12 = vsyncpa [#allocation6], 0  ;;  %s237_s18 = smov [#allocation3]   ;;  %s238_s20 = smov [#allocation5]  }
   0x2   :  { %s19_s19 = sshll.u32 %s237_s18, 4  ;;  %s28_s21 = sshll.u32 %s238_s20, 4  ;;  %s20_s19 = int_to_ptr.vmem [resolvable:$true] %s19_s19  ;;  %s274_s21 = int_to_ptr.vmem [resolvable:$true] %s28_s21 }
   0x3   :  { %s189_s24 = scalar_lea.hbm %s317_s0, 128 }
   0x4   :  { %p190_p0 = scmp.ne.s32.totalorder %s317_s0, %s189_s24  ;;  %p193_p1 = scmp.lt.u32.totalorder %s189_s24, %s317_s0 }
   0x6   :  { %p195_p2 = pnand %p193_p1, %p190_p0 }
   0x8   :  { %198 = shalt.err (!%p195_p2)
}
   0x9   :  { %s199_s29 = scalar_lea.vmem %s20_s19, 128  ;;  %p204_p4 = scmp.lt.s32.totalorder %s20_s19, %s20_s19 }
   0xa   :  { %p200_p3 = scmp.ne.s32.totalorder %s20_s19, %s199_s29  ;;  %p205_p5 = scmp.lt.s32.totalorder %s199_s29, %s199_s29 }
   0xc   :  { %p206_p6 = por %p205_p5, %p204_p4 }
   0xe   :  { %p207_p7 = pnand %p206_p6, %p200_p3 }
  0x10   :  { %210 = shalt.err (!%p207_p7)
}
  0x11   :  { %22 = dma.hbm_to_vmem [thread:$0]  %s317_s0, 128, %s20_s19, [#allocation4]  }
  0x12   :  { %s211_s9 = scalar_lea.hbm %s318_s1, 512 }
  0x13   :  { %p212_p8 = scmp.ne.s32.totalorder %s318_s1, %s211_s9  ;;  %p215_p9 = scmp.lt.u32.totalorder %s211_s9, %s318_s1 }
  0x15   :  { %p217_p10 = pnand %p215_p9, %p212_p8 }
  0x17   :  { %220 = shalt.err (!%p217_p10)
}
  0x18   :  { %s221_s14 = scalar_lea.vmem %s274_s21, 512  ;;  %p226_p12 = scmp.lt.s32.totalorder %s274_s21, %s274_s21 }
  0x19   :  { %p222_p11 = scmp.ne.s32.totalorder %s274_s21, %s221_s14  ;;  %p227_p13 = scmp.lt.s32.totalorder %s221_s14, %s221_s14 }
  0x1b   :  { %p228_p0 = por %p227_p13, %p226_p12 }
  0x1d   :  { %p229_p1 = pnand %p228_p0, %p222_p11 }
  0x1f   :  { %232 = shalt.err (!%p229_p1)
}
  0x20   :  { %s239_s0 = smov 128   ;;  %s240_s15 = smov 8  }
  0x21   :  { %34 = dma.hbm_to_vmem [thread:$0]  %s318_s1, 512, %s274_s21, [#allocation6], %s239_s0, %s239_s0, %s240_s15  }
  0x22   :  { %233 = dma.done.wait [#allocation4], 128  }
  0x23   :  { %234 = vsyncadd [#allocation4], 4294967168 }
  0x24   :  { %235 = dma.done.wait [#allocation6], 512  }
  0x25   :  { %236 = vsyncadd [#allocation6], 4294966784  ;;  %v241_v0 = vmov 0.0|0.0   ;;  %vm242_vm0 = vmmov 0   ;;  %v243_v1 = vmov 0.0   ;;  %v47_v2 = vld [vmem:[#allocation5] sm:$0xff]  ;;  %v147_v17 = vstv %s321_s4 }
  0x26   :  { %176 = vmatprep.subr.bf16.mxu0 %v241_v0  ;;  %173 = vmatprep.mubr.msk.f32.mxu0 %vm242_vm0, %v243_v1  ;;  %v48_v3 = vld [vmem:[#allocation5 + $0x8] sm:$0xff]  ;;  %v49_v4 = vld [vmem:[#allocation5 + $0x10] sm:$0xff]  ;;  %v50_v6 = vld [vmem:[#allocation5 + $0x18] sm:$0xff]  ;;  %vm59_vm1 = vcmask 261120   ;;  %vm142_vm2 = vcmask 523264   ;;  %vm149_vm3 = vcmask 7168  }
  0x27   :  { %v177_v5 = vpack.c.bf16 %v48_v3, %v47_v2  ;;  %v180_v7 = vpack.c.bf16 %v50_v6, %v49_v4  ;;  %v51_v8 = vld [vmem:[#allocation3] sm:$0xff] }
  0x28   :  { %v157_v9 = vld [vmem:[%s319_s2] ss:$0 sm:$0xff] }
  0x29   :  { %178 = vmatpush3.bf16.msra.mxu0 %v177_v5  ;;  %v159_v13 = vld [vmem:[%s320_s3] ss:$0 sm:$0xff] }
  0x2a   :  { %179 = vmatprep.subr.bf16.mxu0 %v241_v0 }
  0x2d   :  { %181 = vmatpush3.bf16.msra.mxu0 %v180_v7 }
  0x30   :  { %174 = vmatmul.mubr.msk.f32.vlgmr.msra.gmra.mrb[0].mxu0 %vm59_vm1, %v51_v8 }
 0x103   :  { %v129_v10 = vpop.f32.mrb[0].mxu0 }
 0x104   :  { %v130_v11 = vadd.f32 %v157_v9, %v129_v10  ;;  %v175_v12 = vpop.f32.mrb[1].mxu0 }
 0x106   :  { %v133_v14 = vmax.f32 %v130_v11, 0.0 }
 0x108   :  { %v141_v15 = vmul.f32 %v159_v13, %v133_v14 }
 0x10a   :  { %v143_v16 = vsel %vm142_vm2, %v141_v15, 0.0 }
 0x10b   :  { %144 = vadd.xlane.f32.xlu0 %v143_v16 }
 0x198   :  { %v145_v18 = vpop.xlane.xlu0 %144 }
 0x199   :  { %v148_v19 = vadd.f32 %v147_v17, %v145_v18 }
 0x19b   :  { %150 = vst.msk [vmem:[%s322_s5] sm:$0xff] %vm149_vm3, %v148_v19 }
 0x19c   :  { %155 = vsyncpa [#allocation4], 1 }
 0x19d   :  { %156 = vsyncpa [#allocation6], 1 }

</bundles_post_ra>
